<compile_context>
chip_gen: v6e
topology: v6e:2x2x1
jax: 0.10.0
libtpu: 0.0.40
codegen_flags: <defaults>
</compile_context>

<pallas_src>
import functools

import jax
import jax.numpy as jnp
from jax.experimental import pallas as pl
from jax.experimental.pallas import tpu as pltpu


def _a2c_fused_kernel(x_ref, w1_ref, b1_ref, w2_ref, b2_ref, out_ref, *,
                      num_actions):
    x = x_ref[...]                                                  # (TB, D) f32

    # ---- layer 1: fused actor|critic hidden, one MXU pass -----------------
    h = jnp.dot(x, w1_ref[...], preferred_element_type=jnp.float32)  # (TB, 2H)
    h = jnp.maximum(h + b1_ref[...], 0.0)                            # bias + ReLU

    # ---- layer 2: block-diagonal fused head -> [logits | value] -----------
    fused = jnp.dot(h, w2_ref[...], preferred_element_type=jnp.float32)
    fused = fused + b2_ref[...]                                      # (TB, A+1)

    # ---- softmax over the first `num_actions` lanes only, in the fused slab
    lane = jax.lax.broadcasted_iota(jnp.int32, fused.shape, 1)
    is_policy = lane < num_actions
    masked = jnp.where(is_policy, fused, -jnp.inf)
    m = jnp.max(masked, axis=-1, keepdims=True)
    e = jnp.exp(jnp.where(is_policy, fused - m, -jnp.inf))           # value lane -> 0
    denom = jnp.sum(e, axis=-1, keepdims=True)
    r = pl.reciprocal(denom, approx=True)                            # EUP vrcp slot
    r = r * (2.0 - denom * r)                                        # Newton step -> f32 prec

    # single lane-dense store: policy lanes softmaxed, value lane raw
    out_ref[...] = jnp.where(is_policy, e * r, fused)


def pack_params(p):
    """Fuse actor/critic weights: W1a|W1c lane-concat, block-diagonal layer 2."""
    H = p["w1a"].shape[1]
    A = p["w2a"].shape[1]
    w1 = jnp.concatenate([p["w1a"], p["w1c"]], axis=1)               # (D, 2H)
    b1 = jnp.concatenate([p["b1a"], p["b1c"]], axis=1)               # (1, 2H)
    w2 = jnp.zeros((2 * H, A + 1), jnp.float32)
    w2 = w2.at[:H, :A].set(p["w2a"])
    w2 = w2.at[H:, A:].set(p["w2c"])                                 # exact (zero padding)
    b2 = jnp.concatenate([p["b2a"], p["b2c"]], axis=1)               # (1, A+1)
    return w1, b1, w2, b2


def a2c_forward(x, packed, num_actions, *, tile_b=128):
    """x: (B, D) f32. packed: (w1, b1, w2, b2) from pack_params."""
    w1, b1, w2, b2 = packed
    B, D = x.shape
    H2 = w1.shape[1]
    A1 = num_actions + 1

    tb = min(tile_b, B)
    if tb != B:
        tb = max(8, (tb // 8) * 8)          # keep sublane-aligned batch tiles
    grid = (pl.cdiv(B, tb),)

    cost = pl.CostEstimate(
        flops=2 * B * (D * H2 + H2 * A1),
        transcendentals=B * A1,
        bytes_accessed=4 * (x.size + w1.size + b1.size + w2.size + b2.size + B * A1),
    )

    kernel = functools.partial(_a2c_fused_kernel, num_actions=num_actions)

    fused_out = pl.pallas_call(
        kernel,
        out_shape=jax.ShapeDtypeStruct((B, A1), jnp.float32),
        grid=grid,
        in_specs=[
            pl.BlockSpec((tb, D), lambda i: (i, 0)),     # batch-tiled activations
            pl.BlockSpec((D, H2), lambda i: (0, 0)),     # weights: DMA once, stay resident
            pl.BlockSpec((1, H2), lambda i: (0, 0)),
            pl.BlockSpec((H2, A1), lambda i: (0, 0)),
            pl.BlockSpec((1, A1), lambda i: (0, 0)),
        ],
        out_specs=pl.BlockSpec((tb, A1), lambda i: (i, 0)),
        compiler_params=pltpu.CompilerParams(
            dimension_semantics=("parallel",)),          # v7x: shard batch over both TCs
        cost_estimate=cost,
    )(x, w1, b1, w2, b2)

    policy = fused_out[:, :num_actions]
    value = fused_out[:, num_actions:]
    return policy, value


def init_params(key, input_size, hidden_size, action_space):
    """Deterministic init mimicking PyTorch nn.Linear default (U[-1/sqrt(fan_in), +])."""
    def linear(k, fan_in, fan_out):
        kw, kb = jax.random.split(k)
        bound = 1.0 / jnp.sqrt(fan_in)
        w = jax.random.uniform(kw, (fan_in, fan_out), jnp.float32, -bound, bound)
        b = jax.random.uniform(kb, (1, fan_out), jnp.float32, -bound, bound)
        return w, b

    k1, k2, k3, k4 = jax.random.split(key, 4)
    w1a, b1a = linear(k1, input_size, hidden_size)
    w2a, b2a = linear(k2, hidden_size, action_space)
    w1c, b1c = linear(k3, input_size, hidden_size)
    w2c, b2c = linear(k4, hidden_size, 1)
    return dict(w1a=w1a, b1a=b1a, w2a=w2a, b2a=b2a,
                w1c=w1c, b1c=b1c, w2c=w2c, b2c=b2c)


def reference_forward(x, p):
    h_a = jnp.maximum(x @ p["w1a"] + p["b1a"], 0.0)
    policy = jax.nn.softmax(h_a @ p["w2a"] + p["b2a"], axis=-1)
    h_c = jnp.maximum(x @ p["w1c"] + p["b1c"], 0.0)
    value = h_c @ p["w2c"] + p["b2c"]
    return policy, value


if __name__ == "__main__":
    INPUT_SIZE = 32
    HIDDEN = 128
    ACTION_SPACE = 8
    BATCH = 256          # >=128 rows per tile feeds the MXU; grid of 2 exercises pipelining

    key = jax.random.PRNGKey(0)
    kp, kx = jax.random.split(key)
    params = init_params(kp, INPUT_SIZE, HIDDEN, ACTION_SPACE)
    packed = pack_params(params)
    x = jax.random.normal(kx, (BATCH, INPUT_SIZE), jnp.float32)

    policy, value = a2c_forward(x, packed, ACTION_SPACE)
    jax.block_until_ready((policy, value))

    # correctness check against pure-JAX reference
    ref_policy, ref_value = reference_forward(x, params)
    assert jnp.allclose(policy, ref_policy, atol=1e-5, rtol=1e-5)
    assert jnp.allclose(value, ref_value, atol=1e-5, rtol=1e-5)
    assert jnp.allclose(jnp.sum(policy, axis=-1), 1.0, atol=1e-5)

    print("KERNEL_OK")
</pallas_src>

<mosaic_0001>
module attributes {stable_mosaic.version = 11 : i64} {
  func.func @_a2c_fused_kernel(%arg0: i32, %arg1: memref<128x32xf32, #tpu.memory_space<vmem>>, %arg2: memref<32x256xf32, #tpu.memory_space<vmem>>, %arg3: memref<1x256xf32, #tpu.memory_space<vmem>>, %arg4: memref<256x9xf32, #tpu.memory_space<vmem>>, %arg5: memref<1x9xf32, #tpu.memory_space<vmem>>, %arg6: memref<128x9xf32, #tpu.memory_space<vmem>>) attributes {dimension_semantics = [#tpu.dimension_semantics<parallel>], iteration_bounds = array<i64: 2>, scalar_prefetch = 0 : i64, scratch_operands = 0 : i64, tpu.core_type = #tpu.core_type<tc>, window_params = [{transform_indices = @transform_0, window_bounds = array<i64: 128, 32>}, {pipeline_mode = #tpu.pipeline_mode<synchronous>, transform_indices = @transform_1, window_bounds = array<i64: 32, 256>}, {pipeline_mode = #tpu.pipeline_mode<synchronous>, transform_indices = @transform_2, window_bounds = array<i64: 1, 256>}, {pipeline_mode = #tpu.pipeline_mode<synchronous>, transform_indices = @transform_3, window_bounds = array<i64: 256, 9>}, {pipeline_mode = #tpu.pipeline_mode<synchronous>, transform_indices = @transform_4, window_bounds = array<i64: 1, 9>}, {transform_indices = @transform_5, window_bounds = array<i64: 128, 9>}]} {
    %c0 = arith.constant 0 : index
    %c0_0 = arith.constant 0 : index
    %0 = vector.load %arg1[%c0, %c0_0] : memref<128x32xf32, #tpu.memory_space<vmem>>, vector<128x32xf32>
    %c0_1 = arith.constant 0 : index
    %c0_2 = arith.constant 0 : index
    %1 = vector.load %arg2[%c0_1, %c0_2] : memref<32x256xf32, #tpu.memory_space<vmem>>, vector<32x256xf32>
    %cst = arith.constant dense<0.000000e+00> : vector<128x256xf32>
    %2 = tpu.matmul %0, %1, %cst {dimension_numbers = #tpu.dot_dimension_numbers<[1], [0], [0], [1], [0, 0, 1, 1], [], []>} : vector<128x32xf32>, vector<32x256xf32>, vector<128x256xf32> -> vector<128x256xf32>
    %c0_3 = arith.constant 0 : index
    %c0_4 = arith.constant 0 : index
    %3 = vector.load %arg3[%c0_3, %c0_4] : memref<1x256xf32, #tpu.memory_space<vmem>>, vector<1x256xf32>
    %4 = vector.broadcast %3 : vector<1x256xf32> to vector<128x256xf32>
    %5 = arith.addf %2, %4 : vector<128x256xf32>
    %cst_5 = arith.constant 0.000000e+00 : f32
    %6 = vector.broadcast %cst_5 : f32 to vector<128x256xf32>
    %7 = arith.maximumf %5, %6 : vector<128x256xf32>
    %c0_6 = arith.constant 0 : index
    %c0_7 = arith.constant 0 : index
    %8 = vector.load %arg4[%c0_6, %c0_7] : memref<256x9xf32, #tpu.memory_space<vmem>>, vector<256x9xf32>
    %cst_8 = arith.constant dense<0.000000e+00> : vector<128x9xf32>
    %9 = tpu.matmul %7, %8, %cst_8 {dimension_numbers = #tpu.dot_dimension_numbers<[1], [0], [0], [1], [0, 0, 1, 1], [], []>} : vector<128x256xf32>, vector<256x9xf32>, vector<128x9xf32> -> vector<128x9xf32>
    %c0_9 = arith.constant 0 : index
    %c0_10 = arith.constant 0 : index
    %10 = vector.load %arg5[%c0_9, %c0_10] : memref<1x9xf32, #tpu.memory_space<vmem>>, vector<1x9xf32>
    %11 = vector.broadcast %10 : vector<1x9xf32> to vector<128x9xf32>
    %12 = arith.addf %9, %11 : vector<128x9xf32>
    %13 = tpu.iota {dimensions = array<i32: 1>} : vector<128x9xi32>
    %c8_i32 = arith.constant 8 : i32
    %14 = vector.broadcast %c8_i32 : i32 to vector<128x9xi32>
    %15 = arith.cmpi slt, %13, %14 : vector<128x9xi32>
    %cst_11 = arith.constant 0xFF800000 : f32
    %16 = vector.broadcast %cst_11 : f32 to vector<128x9xf32>
    %17 = arith.select %15, %12, %16 : vector<128x9xi1>, vector<128x9xf32>
    %cst_12 = arith.constant dense<0xFF800000> : vector<128xf32>
    %18 = vector.multi_reduction <maximumf>, %17, %cst_12 [1] : vector<128x9xf32> to vector<128xf32>
    %19 = vector.shape_cast %18 : vector<128xf32> to vector<128x1xf32>
    %20 = vector.broadcast %19 : vector<128x1xf32> to vector<128x9xf32>
    %21 = arith.subf %12, %20 : vector<128x9xf32>
    %cst_13 = arith.constant 0xFF800000 : f32
    %22 = vector.broadcast %cst_13 : f32 to vector<128x9xf32>
    %23 = arith.select %15, %21, %22 : vector<128x9xi1>, vector<128x9xf32>
    %24 = math.exp %23 : vector<128x9xf32>
    %cst_14 = arith.constant dense<0.000000e+00> : vector<128xf32>
    %25 = vector.multi_reduction <add>, %24, %cst_14 [1] : vector<128x9xf32> to vector<128xf32>
    %26 = vector.shape_cast %25 : vector<128xf32> to vector<128x1xf32>
    %27 = tpu.reciprocal %26 {approx = true} : vector<128x1xf32> -> vector<128x1xf32>
    %28 = arith.mulf %26, %27 : vector<128x1xf32>
    %cst_15 = arith.constant 2.000000e+00 : f32
    %29 = vector.broadcast %cst_15 : f32 to vector<128x1xf32>
    %30 = arith.subf %29, %28 : vector<128x1xf32>
    %31 = arith.mulf %27, %30 : vector<128x1xf32>
    %32 = vector.broadcast %31 : vector<128x1xf32> to vector<128x9xf32>
    %33 = arith.mulf %24, %32 : vector<128x9xf32>
    %34 = arith.select %15, %33, %12 : vector<128x9xi1>, vector<128x9xf32>
    %c0_16 = arith.constant 0 : index
    %c0_17 = arith.constant 0 : index
    %35 = vector.load %arg6[%c0_16, %c0_17] : memref<128x9xf32, #tpu.memory_space<vmem>>, vector<128x9xf32>
    tpu.vector_store %arg6[%c0_16, %c0_17], %34 {strides = array<i32>} : memref<128x9xf32, #tpu.memory_space<vmem>>, vector<128x9xf32>,
    return
  }
  func.func @transform_0(%arg0: i32) -> (i32, i32) {
    %c0_i32 = arith.constant 0 : i32
    %c0_i32_0 = arith.constant 0 : i32
    return %arg0, %c0_i32 : i32, i32
  }
  func.func @transform_1(%arg0: i32) -> (i32, i32) {
    %c0_i32 = arith.constant 0 : i32
    %c0_i32_0 = arith.constant 0 : i32
    %c0_i32_1 = arith.constant 0 : i32
    return %c0_i32, %c0_i32_0 : i32, i32
  }
  func.func @transform_2(%arg0: i32) -> (i32, i32) {
    %c0_i32 = arith.constant 0 : i32
    %c0_i32_0 = arith.constant 0 : i32
    %c0_i32_1 = arith.constant 0 : i32
    return %c0_i32, %c0_i32_0 : i32, i32
  }
  func.func @transform_3(%arg0: i32) -> (i32, i32) {
    %c0_i32 = arith.constant 0 : i32
    %c0_i32_0 = arith.constant 0 : i32
    %c0_i32_1 = arith.constant 0 : i32
    return %c0_i32, %c0_i32_0 : i32, i32
  }
  func.func @transform_4(%arg0: i32) -> (i32, i32) {
    %c0_i32 = arith.constant 0 : i32
    %c0_i32_0 = arith.constant 0 : i32
    %c0_i32_1 = arith.constant 0 : i32
    return %c0_i32, %c0_i32_0 : i32, i32
  }
  func.func @transform_5(%arg0: i32) -> (i32, i32) {
    %c0_i32 = arith.constant 0 : i32
    %c0_i32_0 = arith.constant 0 : i32
    return %arg0, %c0_i32 : i32, i32
  }
}

</mosaic_0001>

<bundles_post_ra>
// kernel: tpu_custom_call.1
= control target key start
LH: loop header
LB: loop body
LE: loop exit
PB: predicated region body
PF: predicated region fallthrough
CT: control target
= control target key end

     0   :  { %s1290_s18 = smov 0   ;;  %s1855_s0 = inlined_call_operand.vmem [shape: f32[256,32], index: 0, kind: input, shape index: {}]   ;;  %s1856_s1 = inlined_call_operand.vmem [shape: f32[32,256], index: 1, kind: input, shape index: {}]   ;;  %s1857_s2 = inlined_call_operand.vmem [shape: f32[1,256], index: 2, kind: input, shape index: {}]   ;;  %s1858_s3 = inlined_call_operand.vmem [shape: f32[256,9], index: 3, kind: input, shape index: {}]   ;;  %s1859_s4 = inlined_call_operand.vmem [shape: f32[1,9], index: 4, kind: input, shape index: {}]   ;;  %s1860_s5 = inlined_call_operand.vmem [shape: f32[256,9], index: 5, kind: output, shape index: {}]  }
   0x1 LB: > { %s1038_s19 = sadd.s32 4294967295, %s1257_s18   ;;  %p1042_p0 = scmp.ge.s32.totalorder %s1257_s18, 1  ;;  %s1257_s18 = sphi %s1290_s18, %s15_s18  }
   0x2   : > { %p188_p1 = scmp.lt.s32.totalorder %s1257_s18, 3 }
   0x4   : > { %p189_p2 = pnand %p1042_p0, %p188_p1 }
   0x5   : > { %s1043_s26 = sshll.u32 (!%p189_p2), %s1038_s19, 4 }
   0x6   : > { %192 = sbr.rel (%p189_p2) target bundleno = 801 (0x321), region = 40  ;;  %p217_p3 = scmp.lt.s32.totalorder (!%p189_p2), %s1043_s26, 31 }
   0xb   : > { %v251_v0 = vld [vmem:[%s1856_s1 + $0x38] sm:$0xff]  ;;  %v250_v1 = vld [vmem:[%s1856_s1 + $0x30] sm:$0xff]  ;;  %v249_v2 = vld [vmem:[%s1856_s1 + $0x28] sm:$0xff]  ;;  %v1259_v4 = vmov 0.0   ;;  %s1862_s26 = smov (!%p217_p3, %s1043_s26), 31  ;;  %vm264_vm0 = vcmask 261120   ;;  %v254_v57 = vlaneseq }
   0xc   : > { %337 = vmatprep.subr.mxu0 %v251_v0  ;;  %v248_v3 = vld [vmem:[%s1856_s1 + $0x20] sm:$0xff]  ;;  %377 = vmatprep.mubr.f32.mxu0 %v1259_v4  ;;  %v247_v5 = vld [vmem:[%s1856_s1 + $0x18] sm:$0xff]  ;;  %v246_v7 = vld [vmem:[%s1856_s1 + $0x10] sm:$0xff]  ;;  %s1044_s19 = sshll.u32 %s1862_s26, 3  ;;  %vm709_vm2 = vcmask 72704  }
   0xd   : > { %338 = vmatpush1.msra.mxu0 %v250_v1  ;;  %v537_v6 = vld [vmem:[%s1858_s3 + $0xf8] sm:$0xff]  ;;  %v245_v9 = vld [vmem:[%s1856_s1 + $0x8] sm:$0xff]  ;;  %v536_v10 = vld [vmem:[%s1858_s3 + $0xf0] sm:$0xff]  ;;  %s1343_s24 = scalar_lea.vmem %s1855_s0, %s1044_s19  ;;  %v255_v58 = vshrl.u32 %v254_v57, 7  ;;  %s1754_s22 = scalar_lea.vmem %s1860_s5, %s1044_s19 }
   0xe   : > { %339 = vmatprep.subr.mxu0 %v249_v2  ;;  %v521_v8 = vld [vmem:[%s1858_s3 + $0x78] sm:$0xff]  ;;  %1146 = vmatprep.subr.mxu1 %v537_v6  ;;  %v244_v11 = vld [vmem:[%s1856_s1] sm:$0xff]  ;;  %v520_v12 = vld [vmem:[%s1858_s3 + $0x70] sm:$0xff] }
   0xf   : > { %340 = vmatpush1.msra.mxu0 %v248_v3  ;;  %1162 = vmatpush3.msra.mxu1 %v521_v8  ;;  %v535_v13 = vld [vmem:[%s1858_s3 + $0xe8] sm:$0xff]  ;;  %v228_v14 = vld [vmem:[%s1343_s24] sm:$0xff]  ;;  %v230_v19 = vld [vmem:[%s1343_s24 + $0x10] sm:$0xff]  ;;  %v256_v59 = vsub.s32 0, %v255_v58  ;;  %v260_v61 = vsub.s32 1, %v255_v58 }
  0x10   : > { %341 = vmatprep.subr.mxu0 %v247_v5  ;;  %1147 = vmatprep.subr.mxu1 %v536_v10  ;;  %v519_v15 = vld [vmem:[%s1858_s3 + $0x68] sm:$0xff]  ;;  %v534_v17 = vld [vmem:[%s1858_s3 + $0xe0] sm:$0xff]  ;;  %v533_v20 = vld [vmem:[%s1858_s3 + $0xd8] sm:$0xff] }
  0x11   : > { %342 = vmatpush1.msra.mxu0 %v246_v7  ;;  %1163 = vmatpush3.msra.mxu1 %v520_v12  ;;  %v229_v16 = vld [vmem:[%s1343_s24 + $0x8] sm:$0xff]  ;;  %v518_v18 = vld [vmem:[%s1858_s3 + $0x60] sm:$0xff]  ;;  %v517_v21 = vld [vmem:[%s1858_s3 + $0x58] sm:$0xff] }
  0x12   : > { %343 = vmatprep.subr.mxu0 %v245_v9  ;;  %1148 = vmatprep.subr.mxu1 %v535_v13  ;;  %v532_v22 = vld [vmem:[%s1858_s3 + $0xd0] sm:$0xff]  ;;  %v231_v24 = vld [vmem:[%s1343_s24 + $0x18] sm:$0xff]  ;;  %v531_v25 = vld [vmem:[%s1858_s3 + $0xc8] sm:$0xff] }
  0x13   : > { %344 = vmatpush1.msra.mxu0 %v244_v11  ;;  %1164 = vmatpush3.msra.mxu1 %v519_v15  ;;  %v516_v23 = vld [vmem:[%s1858_s3 + $0x50] sm:$0xff]  ;;  %v515_v26 = vld [vmem:[%s1858_s3 + $0x48] sm:$0xff]  ;;  %v530_v27 = vld [vmem:[%s1858_s3 + $0xc0] sm:$0xff] }
  0x14   : > { %1047 = vmatmul.mubr.msk.f32.vlgmr.msra.gmra.mxu0 %vm264_vm0, %v228_v14  ;;  %1066 = vmatprep.subr.mxu0 %v537_v6  ;;  %v514_v28 = vld [vmem:[%s1858_s3 + $0x40] sm:$0xff]  ;;  %v529_v30 = vld [vmem:[%s1858_s3 + $0xb8] sm:$0xff]  ;;  %v528_v32 = vld [vmem:[%s1858_s3 + $0xb0] sm:$0xff] }
  0x15   : > { %383 = vmatprep.mubr.f32.mxu0 %v1259_v4  ;;  %1067 = vmatpush3.msra.mxu0 %v521_v8  ;;  %v232_v29 = vld [vmem:[%s1343_s24 + $0x20] sm:$0xff]  ;;  %v513_v31 = vld [vmem:[%s1858_s3 + $0x38] sm:$0xff]  ;;  %v512_v33 = vld [vmem:[%s1858_s3 + $0x30] sm:$0xff] }
  0x16   : > { %1068 = vmatprep.subr.mxu0 %v536_v10  ;;  %1149 = vmatprep.subr.mxu1 %v534_v17  ;;  %v233_v34 = vld [vmem:[%s1343_s24 + $0x28] sm:$0xff]  ;;  %v526_v37 = vld [vmem:[%s1858_s3 + $0xa0] sm:$0xff]  ;;  %v234_v39 = vld [vmem:[%s1343_s24 + $0x30] sm:$0xff] }
  0x17   : > { %1069 = vmatpush3.msra.mxu0 %v520_v12  ;;  %1165 = vmatpush3.msra.mxu1 %v518_v18  ;;  %v527_v35 = vld [vmem:[%s1858_s3 + $0xa8] sm:$0xff]  ;;  %v510_v38 = vld [vmem:[%s1858_s3 + $0x20] sm:$0xff]  ;;  %v235_v40 = vld [vmem:[%s1343_s24 + $0x38] sm:$0xff] }
  0x18   : > { %1048 = vmatmul.mubr.msk.f32.gmra.mxu0 %vm264_vm0, %v229_v16  ;;  %1070 = vmatprep.subr.mxu0 %v535_v13  ;;  %v511_v36 = vld [vmem:[%s1858_s3 + $0x28] sm:$0xff]  ;;  %v236_v41 = vld [vmem:[%s1343_s24 + $0x40] sm:$0xff]  ;;  %v238_v43 = vld [vmem:[%s1343_s24 + $0x50] sm:$0xff] }
  0x19   : > { %389 = vmatprep.mubr.f32.mxu0 %v1259_v4  ;;  %1071 = vmatpush3.msra.mxu0 %v519_v15  ;;  %v237_v42 = vld [vmem:[%s1343_s24 + $0x48] sm:$0xff]  ;;  %v239_v44 = vld [vmem:[%s1343_s24 + $0x58] sm:$0xff]  ;;  %v240_v45 = vld [vmem:[%s1343_s24 + $0x60] sm:$0xff] }
  0x1a   : > { %1072 = vmatprep.subr.mxu0 %v534_v17  ;;  %1150 = vmatprep.subr.mxu1 %v533_v20  ;;  %v241_v46 = vld [vmem:[%s1343_s24 + $0x68] sm:$0xff]  ;;  %v242_v47 = vld [vmem:[%s1343_s24 + $0x70] sm:$0xff]  ;;  %v243_v48 = vld [vmem:[%s1343_s24 + $0x78] sm:$0xff] }
  0x1b   : > { %1073 = vmatpush3.msra.mxu0 %v518_v18  ;;  %1166 = vmatpush3.msra.mxu1 %v517_v21  ;;  %v525_v49 = vld [vmem:[%s1858_s3 + $0x98] sm:$0xff]  ;;  %v524_v51 = vld [vmem:[%s1858_s3 + $0x90] sm:$0xff]  ;;  %v523_v53 = vld [vmem:[%s1858_s3 + $0x88] sm:$0xff] }
  0x1c   : > { %1049 = vmatmul.mubr.msk.f32.gmra.mxu0 %vm264_vm0, %v230_v19  ;;  %1074 = vmatprep.subr.mxu0 %v533_v20  ;;  %v509_v50 = vld [vmem:[%s1858_s3 + $0x18] sm:$0xff]  ;;  %v508_v52 = vld [vmem:[%s1858_s3 + $0x10] sm:$0xff]  ;;  %v507_v54 = vld [vmem:[%s1858_s3 + $0x8] sm:$0xff] }
  0x1d   : > { %395 = vmatprep.mubr.f32.mxu0 %v1259_v4  ;;  %1075 = vmatpush3.msra.mxu0 %v517_v21  ;;  %v522_v55 = vld [vmem:[%s1858_s3 + $0x80] sm:$0xff] }
  0x1e   : > { %1076 = vmatprep.subr.mxu0 %v532_v22  ;;  %1151 = vmatprep.subr.mxu1 %v532_v22  ;;  %v506_v56 = vld [vmem:[%s1858_s3] sm:$0xff] }
  0x1f   : > { %1077 = vmatpush3.msra.mxu0 %v516_v23  ;;  %1167 = vmatpush3.msra.mxu1 %v516_v23  ;;  %v252_v60 = vld [vmem:[%s1857_s2] sm:$0x3] }
  0x20   : > { %1050 = vmatmul.mubr.msk.f32.gmra.mxu0 %vm264_vm0, %v231_v24  ;;  %1078 = vmatprep.subr.mxu0 %v531_v25  ;;  %v1480_v62 = vrot.slane %v252_v60, %v256_v59  ;;  %v1482_v63 = vrot.slane %v252_v60, %v260_v61 }
  0x21   : > { %401 = vmatprep.mubr.f32.mxu0 %v1259_v4  ;;  %1079 = vmatpush3.msra.mxu0 %v515_v26 }
  0x22   : > { %1080 = vmatprep.subr.mxu0 %v530_v27  ;;  %1152 = vmatprep.subr.mxu1 %v531_v25 }
  0x23   : > { %1081 = vmatpush3.msra.mxu0 %v514_v28  ;;  %1168 = vmatpush3.msra.mxu1 %v515_v26 }
  0x24   : > { %1051 = vmatmul.mubr.msk.f32.gmra.mxu0 %vm264_vm0, %v232_v29  ;;  %1082 = vmatprep.subr.mxu0 %v529_v30 }
  0x25   : > { %407 = vmatprep.mubr.f32.mxu0 %v1259_v4  ;;  %1083 = vmatpush3.msra.mxu0 %v513_v31 }
  0x26   : > { %1084 = vmatprep.subr.mxu0 %v528_v32  ;;  %1153 = vmatprep.subr.mxu1 %v530_v27 }
  0x27   : > { %1085 = vmatpush3.msra.mxu0 %v512_v33  ;;  %1169 = vmatpush3.msra.mxu1 %v514_v28 }
  0x28   : > { %1052 = vmatmul.mubr.msk.f32.gmra.mxu0 %vm264_vm0, %v233_v34  ;;  %1086 = vmatprep.subr.mxu0 %v527_v35 }
  0x29   : > { %413 = vmatprep.mubr.f32.mxu0 %v1259_v4  ;;  %1087 = vmatpush3.msra.mxu0 %v511_v36 }
  0x2a   : > { %1088 = vmatprep.subr.mxu0 %v526_v37  ;;  %1154 = vmatprep.subr.mxu1 %v529_v30 }
  0x2b   : > { %1089 = vmatpush3.msra.mxu0 %v510_v38  ;;  %1170 = vmatpush3.msra.mxu1 %v513_v31 }
  0x2c   : > { %1053 = vmatmul.mubr.msk.f32.gmra.mxu0 %vm264_vm0, %v234_v39  ;;  %1155 = vmatprep.subr.mxu1 %v528_v32 }
  0x2d   : > { %419 = vmatprep.mubr.f32.mxu0 %v1259_v4  ;;  %1171 = vmatpush3.msra.mxu1 %v512_v33 }
  0x2e   : > { %1156 = vmatprep.subr.mxu1 %v527_v35  ;;  %1090 = vmatprep.subr.mxu0 %v525_v49 }
  0x2f   : > { %1172 = vmatpush3.msra.mxu1 %v511_v36  ;;  %1091 = vmatpush3.msra.mxu0 %v509_v50 }
  0x30   : > { %1054 = vmatmul.mubr.msk.f32.gmra.mxu0 %vm264_vm0, %v235_v40  ;;  %1157 = vmatprep.subr.mxu1 %v526_v37 }
  0x31   : > { %425 = vmatprep.mubr.f32.mxu0 %v1259_v4  ;;  %1173 = vmatpush3.msra.mxu1 %v510_v38 }
  0x32   : > { %1158 = vmatprep.subr.mxu1 %v525_v49  ;;  %1092 = vmatprep.subr.mxu0 %v524_v51 }
  0x33   : > { %1174 = vmatpush3.msra.mxu1 %v509_v50  ;;  %1093 = vmatpush3.msra.mxu0 %v508_v52 }
  0x34   : > { %1055 = vmatmul.mubr.msk.f32.gmra.mxu0 %vm264_vm0, %v236_v41  ;;  %1159 = vmatprep.subr.mxu1 %v524_v51 }
  0x35   : > { %431 = vmatprep.mubr.f32.mxu0 %v1259_v4  ;;  %1175 = vmatpush3.msra.mxu1 %v508_v52 }
  0x36   : > { %1094 = vmatprep.subr.mxu0 %v523_v53  ;;  %1160 = vmatprep.subr.mxu1 %v523_v53 }
  0x37   : > { %1095 = vmatpush3.msra.mxu0 %v507_v54  ;;  %1176 = vmatpush3.msra.mxu1 %v507_v54 }
  0x38   : > { %1056 = vmatmul.mubr.msk.f32.gmra.mxu0 %vm264_vm0, %v237_v42  ;;  %1096 = vmatprep.subr.mxu0 %v522_v55 }
  0x39   : > { %437 = vmatprep.mubr.f32.mxu0 %v1259_v4  ;;  %1161 = vmatprep.subr.mxu1 %v522_v55 }
  0x3a   : > { %1097 = vmatpush3.msra.mxu0 %v506_v56  ;;  %1177 = vmatpush3.msra.mxu1 %v506_v56 }
  0x3c   : > { %1057 = vmatmul.mubr.msk.f32.gmra.mxu0 %vm264_vm0, %v238_v43 }
  0x3d   : > { %443 = vmatprep.mubr.f32.mxu0 %v1259_v4 }
  0x40   : > { %1058 = vmatmul.mubr.msk.f32.gmra.mxu0 %vm264_vm0, %v239_v44 }
  0x41   : > { %449 = vmatprep.mubr.f32.mxu0 %v1259_v4 }
  0x44   : > { %1059 = vmatmul.mubr.msk.f32.gmra.mxu0 %vm264_vm0, %v240_v45 }
  0x45   : > { %455 = vmatprep.mubr.f32.mxu0 %v1259_v4 }
  0x48   : > { %1060 = vmatmul.mubr.msk.f32.gmra.mxu0 %vm264_vm0, %v241_v46 }
  0x49   : > { %461 = vmatprep.mubr.f32.mxu0 %v1259_v4 }
  0x4c   : > { %1061 = vmatmul.mubr.msk.f32.gmra.mxu0 %vm264_vm0, %v242_v47 }
  0x4d   : > { %467 = vmatprep.mubr.f32.mxu0 %v1259_v4 }
  0x50   : > { %1062 = vmatmul.mubr.msk.f32.gmra.mxu0 %vm264_vm0, %v243_v48 }
  0xd4   : > { %v379_v0 = vpop.f32.mrf.mxu0 }
  0xd5   : > { %v380_v1 = vadd.f32 %v379_v0, %v1480_v62 }
  0xd6   : > { %v381_v2 = vpop.f32.mrf.mxu0 }
  0xd7   : > { %v382_v3 = vadd.f32 %v381_v2, %v1482_v63  ;;  %v474_v6 = vmax.f32 %v380_v1, 0.0 }
  0xd8   : > { %v385_v4 = vpop.f32.mrf.mxu0 }
  0xd9   : > { %v475_v5 = vmax.f32 %v382_v3, 0.0  ;;  %v386_v7 = vadd.f32 %v385_v4, %v1480_v62 }
  0xda   : > { %v387_v8 = vpop.f32.mrf.mxu0 }
  0xdb   : > { %v388_v9 = vadd.f32 %v387_v8, %v1482_v63  ;;  %609 = vmatprep.mubr.f32.mxu0 %v475_v5  ;;  %v476_v12 = vmax.f32 %v386_v7, 0.0 }
  0xdc   : > { %v391_v10 = vpop.f32.mrf.mxu0  ;;  %610 = vmatmul.mubr.f32.vlgmr.msra.gmra.mxu0 %v474_v6 }
  0xdd   : > { %v477_v11 = vmax.f32 %v388_v9, 0.0  ;;  %v392_v13 = vadd.f32 %v391_v10, %v1480_v62 }
  0xde   : > { %v393_v14 = vpop.f32.mrf.mxu0 }
  0xdf   : > { %v394_v15 = vadd.f32 %v393_v14, %v1482_v63  ;;  %614 = vmatprep.mubr.f32.mxu0 %v477_v11  ;;  %v478_v18 = vmax.f32 %v392_v13, 0.0 }
  0xe0   : > { %v397_v16 = vpop.f32.mrf.mxu0  ;;  %615 = vmatmul.mubr.f32.gmra.mxu0 %v476_v12 }
  0xe1   : > { %v479_v17 = vmax.f32 %v394_v15, 0.0  ;;  %v398_v19 = vadd.f32 %v397_v16, %v1480_v62 }
  0xe2   : > { %v399_v20 = vpop.f32.mrf.mxu0 }
  0xe3   : > { %619 = vmatprep.mubr.f32.mxu0 %v479_v17  ;;  %v400_v21 = vadd.f32 %v399_v20, %v1482_v63  ;;  %v480_v24 = vmax.f32 %v398_v19, 0.0 }
  0xe4   : > { %v403_v22 = vpop.f32.mrf.mxu0  ;;  %620 = vmatmul.mubr.f32.gmra.mxu0 %v478_v18 }
  0xe5   : > { %v481_v23 = vmax.f32 %v400_v21, 0.0  ;;  %v404_v25 = vadd.f32 %v403_v22, %v1480_v62 }
  0xe6   : > { %v405_v26 = vpop.f32.mrf.mxu0 }
  0xe7   : > { %v406_v27 = vadd.f32 %v405_v26, %v1482_v63  ;;  %624 = vmatprep.mubr.f32.mxu1 %v481_v23  ;;  %v482_v30 = vmax.f32 %v404_v25, 0.0 }
  0xe8   : > { %v409_v28 = vpop.f32.mrf.mxu0  ;;  %625 = vmatmul.mubr.f32.vlgmr.msra.gmra.mxu1 %v480_v24 }
  0xe9   : > { %v483_v29 = vmax.f32 %v406_v27, 0.0  ;;  %v410_v31 = vadd.f32 %v409_v28, %v1480_v62 }
  0xea   : > { %v411_v32 = vpop.f32.mrf.mxu0 }
  0xeb   : > { %v412_v33 = vadd.f32 %v411_v32, %v1482_v63  ;;  %629 = vmatprep.mubr.f32.mxu1 %v483_v29  ;;  %v484_v36 = vmax.f32 %v410_v31, 0.0 }
  0xec   : > { %v415_v34 = vpop.f32.mrf.mxu0  ;;  %630 = vmatmul.mubr.f32.gmra.mxu1 %v482_v30 }
  0xed   : > { %v485_v35 = vmax.f32 %v412_v33, 0.0  ;;  %v416_v37 = vadd.f32 %v415_v34, %v1480_v62 }
  0xee   : > { %v417_v38 = vpop.f32.mrf.mxu0 }
  0xef   : > { %v418_v39 = vadd.f32 %v417_v38, %v1482_v63  ;;  %634 = vmatprep.mubr.f32.mxu1 %v485_v35  ;;  %v486_v42 = vmax.f32 %v416_v37, 0.0  ;;  %v1517_v35 = vand.u32 127, %v254_v57  ;;  %v1522_v37 = vld [vmem:[%s1859_s4] ss:$0 sm:$0xff] }
  0xf0   : > { %v421_v40 = vpop.f32.mrf.mxu0  ;;  %635 = vmatmul.mubr.f32.gmra.mxu1 %v484_v36 }
  0xf1   : > { %v487_v41 = vmax.f32 %v418_v39, 0.0  ;;  %v422_v43 = vadd.f32 %v421_v40, %v1480_v62  ;;  %vm692_vm1 = vcmp.lt.s32.totalorder %v1517_v35, 8 }
  0xf2   : > { %v423_v44 = vpop.f32.mrf.mxu0 }
  0xf3   : > { %v424_v45 = vadd.f32 %v423_v44, %v1482_v63  ;;  %639 = vmatprep.mubr.f32.mxu1 %v487_v41  ;;  %v488_v48 = vmax.f32 %v422_v43, 0.0 }
  0xf4   : > { %v427_v46 = vpop.f32.mrf.mxu0  ;;  %640 = vmatmul.mubr.f32.gmra.mxu1 %v486_v42 }
  0xf5   : > { %v489_v47 = vmax.f32 %v424_v45, 0.0  ;;  %v428_v49 = vadd.f32 %v427_v46, %v1480_v62 }
  0xf6   : > { %v429_v50 = vpop.f32.mrf.mxu0 }
  0xf7   : > { %v430_v51 = vadd.f32 %v429_v50, %v1482_v63  ;;  %644 = vmatprep.mubr.f32.mxu1 %v489_v47  ;;  %v490_v54 = vmax.f32 %v428_v49, 0.0 }
  0xf8   : > { %v433_v52 = vpop.f32.mrf.mxu0  ;;  %645 = vmatmul.mubr.f32.gmra.mxu1 %v488_v48 }
  0xf9   : > { %v491_v53 = vmax.f32 %v430_v51, 0.0  ;;  %v434_v55 = vadd.f32 %v433_v52, %v1480_v62 }
  0xfa   : > { %v435_v56 = vpop.f32.mrf.mxu0 }
  0xfb   : > { %v436_v58 = vadd.f32 %v435_v56, %v1482_v63  ;;  %649 = vmatprep.mubr.f32.mxu1 %v491_v53  ;;  %v492_v61 = vmax.f32 %v434_v55, 0.0 }
  0xfc   : > { %v439_v59 = vpop.f32.mrf.mxu0  ;;  %650 = vmatmul.mubr.f32.gmra.mxu1 %v490_v54 }
  0xfd   : > { %v493_v60 = vmax.f32 %v436_v58, 0.0  ;;  %v440_v0 = vadd.f32 %v439_v59, %v1480_v62 }
  0xfe   : > { %v441_v1 = vpop.f32.mrf.mxu0 }
  0xff   : > { %v442_v2 = vadd.f32 %v441_v1, %v1482_v63  ;;  %654 = vmatprep.mubr.f32.mxu1 %v493_v60  ;;  %v494_v5 = vmax.f32 %v440_v0, 0.0 }
 0x100   : > { %v445_v3 = vpop.f32.mrf.mxu0  ;;  %655 = vmatmul.mubr.f32.gmra.mxu1 %v492_v61 }
 0x101   : > { %v495_v4 = vmax.f32 %v442_v2, 0.0  ;;  %v446_v6 = vadd.f32 %v445_v3, %v1480_v62 }
 0x102   : > { %v447_v7 = vpop.f32.mrf.mxu0 }
 0x103   : > { %v448_v8 = vadd.f32 %v447_v7, %v1482_v63  ;;  %659 = vmatprep.mubr.f32.mxu1 %v495_v4  ;;  %v496_v11 = vmax.f32 %v446_v6, 0.0 }
 0x104   : > { %v451_v9 = vpop.f32.mrf.mxu0  ;;  %660 = vmatmul.mubr.f32.gmra.mxu1 %v494_v5 }
 0x105   : > { %v497_v10 = vmax.f32 %v448_v8, 0.0  ;;  %v452_v12 = vadd.f32 %v451_v9, %v1480_v62 }
 0x106   : > { %v453_v13 = vpop.f32.mrf.mxu0 }
 0x107   : > { %v454_v14 = vadd.f32 %v453_v13, %v1482_v63  ;;  %664 = vmatprep.mubr.f32.mxu1 %v497_v10  ;;  %v498_v17 = vmax.f32 %v452_v12, 0.0 }
 0x108   : > { %v457_v15 = vpop.f32.mrf.mxu0  ;;  %665 = vmatmul.mubr.f32.gmra.mxu1 %v496_v11 }
 0x109   : > { %v499_v16 = vmax.f32 %v454_v14, 0.0  ;;  %v458_v18 = vadd.f32 %v457_v15, %v1480_v62 }
 0x10a   : > { %v459_v19 = vpop.f32.mrf.mxu0 }
 0x10b   : > { %v460_v20 = vadd.f32 %v459_v19, %v1482_v63  ;;  %669 = vmatprep.mubr.f32.mxu1 %v499_v16  ;;  %v500_v23 = vmax.f32 %v458_v18, 0.0 }
 0x10c   : > { %v463_v21 = vpop.f32.mrf.mxu0  ;;  %670 = vmatmul.mubr.f32.gmra.mxu1 %v498_v17 }
 0x10d   : > { %v501_v22 = vmax.f32 %v460_v20, 0.0  ;;  %v464_v24 = vadd.f32 %v463_v21, %v1480_v62 }
 0x10e   : > { %v465_v25 = vpop.f32.mrf.mxu0 }
 0x10f   : > { %v466_v26 = vadd.f32 %v465_v25, %v1482_v63  ;;  %674 = vmatprep.mubr.f32.mxu1 %v501_v22  ;;  %v502_v29 = vmax.f32 %v464_v24, 0.0 }
 0x110   : > { %v469_v27 = vpop.f32.mrf.mxu0  ;;  %675 = vmatmul.mubr.f32.gmra.mxu1 %v500_v23 }
 0x111   : > { %v503_v28 = vmax.f32 %v466_v26, 0.0  ;;  %v470_v30 = vadd.f32 %v469_v27, %v1480_v62 }
 0x112   : > { %v471_v31 = vpop.f32.mrf.mxu0 }
 0x113   : > { %v472_v32 = vadd.f32 %v471_v31, %v1482_v63  ;;  %679 = vmatprep.mubr.f32.mxu1 %v503_v28  ;;  %v504_v34 = vmax.f32 %v470_v30, 0.0 }
 0x114   : > { %680 = vmatmul.mubr.f32.gmra.mxu1 %v502_v29 }
 0x115   : > { %v505_v33 = vmax.f32 %v472_v32, 0.0 }
 0x117   : > { %684 = vmatprep.mubr.f32.mxu1 %v505_v33 }
 0x118   : > { %685 = vmatmul.mubr.f32.gmra.mxu1 %v504_v34 }
 0x19c   : > { %v1098_v36 = vpop.f32.mrf.mxu0 }
 0x19e   : > { %v1099_v38 = vpop.f32.mrf.mxu0 }
 0x19f   : > { %v1100_v62 = vadd.f32 %v1099_v38, %v1098_v36 }
 0x1a0   : > { %v1101_v63 = vpop.f32.mrf.mxu0 }
 0x1a1   : > { %v1526_v39 = vadd.f32 %v1100_v62, %v1522_v37 }
 0x1a2   : > { %v1102_v40 = vpop.f32.mrf.mxu0 }
 0x1a3   : > { %v1103_v41 = vadd.f32 %v1102_v40, %v1101_v63  ;;  %v693_v57 = vsel %vm692_vm1, %v1526_v39, -inf }
 0x1a4   : > { %v1104_v42 = vpop.f32.mrf.mxu0  ;;  %v710_v43 = vsel %vm709_vm2, %v693_v57, -inf }
 0x1a5   : > { %v1533_v44 = vadd.f32 %v1103_v41, %v1522_v37  ;;  %711 = vmax.xlane.f32.xlu0 %v710_v43 }
 0x1a6   : > { %v1105_v45 = vpop.f32.mrf.mxu0 }
 0x1a7   : > { %v1106_v46 = vadd.f32 %v1105_v45, %v1104_v42  ;;  %v694_v47 = vsel %vm692_vm1, %v1533_v44, -inf }
 0x1a8   : > { %v1107_v48 = vpop.f32.mrf.mxu1  ;;  %v713_v49 = vsel %vm709_vm2, %v694_v47, -inf }
 0x1a9   : > { %v1540_v50 = vadd.f32 %v1106_v46, %v1522_v37  ;;  %714 = vmax.xlane.f32.xlu0 %v713_v49 }
 0x1aa   : > { %v1108_v51 = vpop.f32.mrf.mxu1 }
 0x1ab   : > { %v1109_v52 = vadd.f32 %v1108_v51, %v1107_v48  ;;  %v695_v53 = vsel %vm692_vm1, %v1540_v50, -inf }
 0x1ac   : > { %v1110_v54 = vpop.f32.mrf.mxu1  ;;  %v716_v55 = vsel %vm709_vm2, %v695_v53, -inf }
 0x1ad   : > { %v1547_v56 = vadd.f32 %v1109_v52, %v1522_v37  ;;  %717 = vmax.xlane.f32.xlu1 %v716_v55 }
 0x1ae   : > { %v1111_v58 = vpop.f32.mrf.mxu1 }
 0x1af   : > { %v1112_v59 = vadd.f32 %v1111_v58, %v1110_v54  ;;  %v696_v60 = vsel %vm692_vm1, %v1547_v56, -inf }
 0x1b0   : > { %v1113_v61 = vpop.f32.mrf.mxu1  ;;  %v719_v0 = vsel %vm709_vm2, %v696_v60, -inf }
 0x1b1   : > { %v1554_v1 = vadd.f32 %v1112_v59, %v1522_v37  ;;  %720 = vmax.xlane.f32.xlu1 %v719_v0 }
 0x1b2   : > { %v1114_v2 = vpop.f32.mrf.mxu1 }
 0x1b3   : > { %v1115_v3 = vadd.f32 %v1114_v2, %v1113_v61  ;;  %v697_v4 = vsel %vm692_vm1, %v1554_v1, -inf }
 0x1b4   : > { %v1116_v5 = vpop.f32.mrf.mxu1  ;;  %v722_v6 = vsel %vm709_vm2, %v697_v4, -inf }
 0x1b5   : > { %v1561_v7 = vadd.f32 %v1115_v3, %v1522_v37  ;;  %723 = vmax.xlane.f32.xlu0 %v722_v6 }
 0x1b6   : > { %v1117_v8 = vpop.f32.mrf.mxu1 }
 0x1b7   : > { %v1118_v9 = vadd.f32 %v1117_v8, %v1116_v5  ;;  %v698_v10 = vsel %vm692_vm1, %v1561_v7, -inf }
 0x1b8   : > { %v1119_v11 = vpop.f32.mrf.mxu1  ;;  %v725_v12 = vsel %vm709_vm2, %v698_v10, -inf }
 0x1b9   : > { %v1568_v13 = vadd.f32 %v1118_v9, %v1522_v37  ;;  %726 = vmax.xlane.f32.xlu1 %v725_v12 }
 0x1ba   : > { %v1120_v14 = vpop.f32.mrf.mxu1 }
 0x1bb   : > { %v1121_v15 = vadd.f32 %v1120_v14, %v1119_v11  ;;  %v699_v16 = vsel %vm692_vm1, %v1568_v13, -inf }
 0x1bc   : > { %v1122_v17 = vpop.f32.mrf.mxu1  ;;  %v728_v18 = vsel %vm709_vm2, %v699_v16, -inf }
 0x1bd   : > { %v1575_v19 = vadd.f32 %v1121_v15, %v1522_v37  ;;  %729 = vmax.xlane.f32.xlu0 %v728_v18 }
 0x1be   : > { %v1123_v20 = vpop.f32.mrf.mxu1 }
 0x1bf   : > { %v1124_v21 = vadd.f32 %v1123_v20, %v1122_v17  ;;  %v700_v22 = vsel %vm692_vm1, %v1575_v19, -inf }
 0x1c0   : > { %v1125_v23 = vpop.f32.mrf.mxu1  ;;  %v731_v24 = vsel %vm709_vm2, %v700_v22, -inf }
 0x1c1   : > { %v1582_v25 = vadd.f32 %v1124_v21, %v1522_v37  ;;  %732 = vmax.xlane.f32.xlu1 %v731_v24 }
 0x1c2   : > { %v1126_v26 = vpop.f32.mrf.mxu1 }
 0x1c3   : > { %v1127_v27 = vadd.f32 %v1126_v26, %v1125_v23  ;;  %v701_v28 = vsel %vm692_vm1, %v1582_v25, -inf }
 0x1c4   : > { %v1128_v29 = vpop.f32.mrf.mxu1  ;;  %v734_v30 = vsel %vm709_vm2, %v701_v28, -inf }
 0x1c5   : > { %v1589_v31 = vadd.f32 %v1127_v27, %v1522_v37  ;;  %735 = vmax.xlane.f32.xlu0 %v734_v30 }
 0x1c6   : > { %v1129_v32 = vpop.f32.mrf.mxu1 }
 0x1c7   : > { %v1130_v33 = vadd.f32 %v1129_v32, %v1128_v29  ;;  %v702_v34 = vsel %vm692_vm1, %v1589_v31, -inf }
 0x1c8   : > { %v1131_v36 = vpop.f32.mrf.mxu1  ;;  %v737_v38 = vsel %vm709_vm2, %v702_v34, -inf }
 0x1c9   : > { %v1596_v62 = vadd.f32 %v1130_v33, %v1522_v37  ;;  %738 = vmax.xlane.f32.xlu1 %v737_v38 }
 0x1ca   : > { %v1132_v63 = vpop.f32.mrf.mxu1 }
 0x1cb   : > { %v1133_v40 = vadd.f32 %v1132_v63, %v1131_v36  ;;  %v703_v41 = vsel %vm692_vm1, %v1596_v62, -inf }
 0x1cc   : > { %v1134_v57 = vpop.f32.mrf.mxu1  ;;  %v740_v42 = vsel %vm709_vm2, %v703_v41, -inf }
 0x1cd   : > { %v1603_v43 = vadd.f32 %v1133_v40, %v1522_v37  ;;  %741 = vmax.xlane.f32.xlu0 %v740_v42 }
 0x1ce   : > { %v1135_v45 = vpop.f32.mrf.mxu1 }
 0x1cf   : > { %v1136_v46 = vadd.f32 %v1135_v45, %v1134_v57  ;;  %v704_v47 = vsel %vm692_vm1, %v1603_v43, -inf }
 0x1d0   : > { %v1137_v48 = vpop.f32.mrf.mxu1  ;;  %v743_v49 = vsel %vm709_vm2, %v704_v47, -inf }
 0x1d1   : > { %v1610_v51 = vadd.f32 %v1136_v46, %v1522_v37  ;;  %744 = vmax.xlane.f32.xlu1 %v743_v49 }
 0x1d2   : > { %v1138_v52 = vpop.f32.mrf.mxu1 }
 0x1d3   : > { %v1139_v53 = vadd.f32 %v1138_v52, %v1137_v48  ;;  %v705_v54 = vsel %vm692_vm1, %v1610_v51, -inf }
 0x1d4   : > { %v1140_v55 = vpop.f32.mrf.mxu1  ;;  %v746_v58 = vsel %vm709_vm2, %v705_v54, -inf }
 0x1d5   : > { %v1617_v59 = vadd.f32 %v1139_v53, %v1522_v37  ;;  %747 = vmax.xlane.f32.xlu0 %v746_v58 }
 0x1d6   : > { %v1141_v60 = vpop.f32.mrf.mxu1 }
 0x1d7   : > { %v1142_v61 = vadd.f32 %v1141_v60, %v1140_v55  ;;  %v706_v0 = vsel %vm692_vm1, %v1617_v59, -inf }
 0x1d8   : > { %v1143_v2 = vpop.f32.mrf.mxu1  ;;  %v749_v3 = vsel %vm709_vm2, %v706_v0, -inf }
 0x1d9   : > { %v1624_v4 = vadd.f32 %v1142_v61, %v1522_v37  ;;  %750 = vmax.xlane.f32.xlu1 %v749_v3 }
 0x1da   : > { %v1144_v5 = vpop.f32.mrf.mxu1 }
 0x1db   : > { %v1145_v6 = vadd.f32 %v1144_v5, %v1143_v2  ;;  %v707_v8 = vsel %vm692_vm1, %v1624_v4, -inf }
 0x1dc   : > { %v752_v9 = vsel %vm709_vm2, %v707_v8, -inf }
 0x1dd   : > { %v1631_v10 = vadd.f32 %v1145_v6, %v1522_v37  ;;  %753 = vmax.xlane.f32.xlu0 %v752_v9 }
 0x1df   : > { %v708_v11 = vsel %vm692_vm1, %v1631_v10, -inf }
 0x1e0   : > { %v755_v12 = vsel %vm709_vm2, %v708_v11, -inf }
 0x1e1   : > { %756 = vmax.xlane.f32.xlu1 %v755_v12 }
 0x22e   : > { %v712_v14 = vpop.xlane.xlu0 %711 }
 0x22f   : > { %v758_v15 = vsub.f32 %v1526_v39, %v712_v14 }
 0x231   : > { %v774_v16 = vsel %vm692_vm1, %v758_v15, -inf }
 0x232   : > { %v790_v17 = vmul.f32 1.442695, %v774_v16  ;;  %v715_v18 = vpop.xlane.xlu0 %714 }
 0x233   : > { %v759_v20 = vsub.f32 %v1533_v44, %v715_v18 }
 0x234   : > { %1187 = vpow2.f32 %v790_v17 }
 0x235   : > { %v775_v37 = vsel %vm692_vm1, %v759_v20, -inf }
 0x236   : > { %v792_v21 = vmul.f32 1.442695, %v775_v37  ;;  %v718_v22 = vpop.xlane.xlu1 %717 }
 0x237   : > { %v760_v23 = vsub.f32 %v1540_v50, %v718_v22 }
 0x238   : > { %1189 = vpow2.f32 %v792_v21 }
 0x239   : > { %v776_v24 = vsel %vm692_vm1, %v760_v23, -inf }
 0x23a   : > { %v794_v26 = vmul.f32 1.442695, %v776_v24  ;;  %v721_v27 = vpop.xlane.xlu1 %720 }
 0x23b   : > { %v761_v28 = vsub.f32 %v1547_v56, %v721_v27 }
 0x23c   : > { %1191 = vpow2.f32 %v794_v26 }
 0x23d   : > { %v777_v29 = vsel %vm692_vm1, %v761_v28, -inf }
 0x23e   : > { %v796_v30 = vmul.f32 1.442695, %v777_v29  ;;  %v724_v32 = vpop.xlane.xlu0 %723 }
 0x23f   : > { %v762_v33 = vsub.f32 %v1554_v1, %v724_v32 }
 0x240   : > { %1193 = vpow2.f32 %v796_v30 }
 0x241   : > { %v1650_v34 = vpop.eup %1187  ;;  %v778_v36 = vsel %vm692_vm1, %v762_v33, -inf }
 0x242   : > { %v798_v38 = vmul.f32 1.442695, %v778_v36  ;;  %v727_v63 = vpop.xlane.xlu1 %726  ;;  %v822_v40 = vsel %vm709_vm2, %v1650_v34, 0.0 }
 0x243   : > { %v763_v41 = vsub.f32 %v1561_v7, %v727_v63  ;;  %823 = vadd.xlane.f32.xlu0 %v822_v40 }
 0x244   : > { %1195 = vpow2.f32 %v798_v38 }
 0x245   : > { %v1657_v57 = vpop.eup %1189  ;;  %v779_v42 = vsel %vm692_vm1, %v763_v41, -inf }
 0x246   : > { %v800_v45 = vmul.f32 1.442695, %v779_v42  ;;  %v730_v46 = vpop.xlane.xlu0 %729  ;;  %v825_v47 = vsel %vm709_vm2, %v1657_v57, 0.0 }
 0x247   : > { %v764_v48 = vsub.f32 %v1568_v13, %v730_v46  ;;  %826 = vadd.xlane.f32.xlu1 %v825_v47 }
 0x248   : > { %1197 = vpow2.f32 %v800_v45 }
 0x249   : > { %v1664_v49 = vpop.eup %1191  ;;  %v780_v52 = vsel %vm692_vm1, %v764_v48, -inf }
 0x24a   : > { %v802_v53 = vmul.f32 1.442695, %v780_v52  ;;  %v733_v54 = vpop.xlane.xlu1 %732  ;;  %v828_v55 = vsel %vm709_vm2, %v1664_v49, 0.0 }
 0x24b   : > { %v765_v58 = vsub.f32 %v1575_v19, %v733_v54  ;;  %829 = vadd.xlane.f32.xlu0 %v828_v55 }
 0x24c   : > { %1199 = vpow2.f32 %v802_v53 }
 0x24d   : > { %v1671_v60 = vpop.eup %1193  ;;  %v781_v61 = vsel %vm692_vm1, %v765_v58, -inf }
 0x24e   : > { %v804_v0 = vmul.f32 1.442695, %v781_v61  ;;  %v736_v2 = vpop.xlane.xlu0 %735  ;;  %v831_v3 = vsel %vm709_vm2, %v1671_v60, 0.0 }
 0x24f   : > { %v766_v5 = vsub.f32 %v1582_v25, %v736_v2  ;;  %832 = vadd.xlane.f32.xlu1 %v831_v3 }
 0x250   : > { %1201 = vpow2.f32 %v804_v0 }
 0x251   : > { %v1678_v6 = vpop.eup %1195  ;;  %v782_v8 = vsel %vm692_vm1, %v766_v5, -inf }
 0x252   : > { %v806_v9 = vmul.f32 1.442695, %v782_v8  ;;  %v739_v11 = vpop.xlane.xlu1 %738  ;;  %v834_v12 = vsel %vm709_vm2, %v1678_v6, 0.0 }
 0x253   : > { %v767_v14 = vsub.f32 %v1589_v31, %v739_v11  ;;  %835 = vadd.xlane.f32.xlu0 %v834_v12 }
 0x254   : > { %1203 = vpow2.f32 %v806_v9 }
 0x255   : > { %v1685_v15 = vpop.eup %1197  ;;  %v783_v16 = vsel %vm692_vm1, %v767_v14, -inf }
 0x256   : > { %v808_v17 = vmul.f32 1.442695, %v783_v16  ;;  %v742_v18 = vpop.xlane.xlu0 %741  ;;  %v837_v20 = vsel %vm709_vm2, %v1685_v15, 0.0 }
 0x257   : > { %v768_v37 = vsub.f32 %v1596_v62, %v742_v18  ;;  %838 = vadd.xlane.f32.xlu1 %v837_v20 }
 0x258   : > { %1205 = vpow2.f32 %v808_v17 }
 0x259   : > { %v1692_v21 = vpop.eup %1199  ;;  %v784_v22 = vsel %vm692_vm1, %v768_v37, -inf }
 0x25a   : > { %v810_v23 = vmul.f32 1.442695, %v784_v22  ;;  %v745_v24 = vpop.xlane.xlu1 %744  ;;  %v840_v26 = vsel %vm709_vm2, %v1692_v21, 0.0 }
 0x25b   : > { %v769_v27 = vsub.f32 %v1603_v43, %v745_v24  ;;  %841 = vadd.xlane.f32.xlu0 %v840_v26 }
 0x25c   : > { %1207 = vpow2.f32 %v810_v23 }
 0x25d   : > { %v1699_v28 = vpop.eup %1201  ;;  %v785_v29 = vsel %vm692_vm1, %v769_v27, -inf }
 0x25e   : > { %v812_v30 = vmul.f32 1.442695, %v785_v29  ;;  %v748_v32 = vpop.xlane.xlu0 %747  ;;  %v843_v33 = vsel %vm709_vm2, %v1699_v28, 0.0 }
 0x25f   : > { %v770_v36 = vsub.f32 %v1610_v51, %v748_v32  ;;  %844 = vadd.xlane.f32.xlu1 %v843_v33 }
 0x260   : > { %1209 = vpow2.f32 %v812_v30 }
 0x261   : > { %v1706_v38 = vpop.eup %1203  ;;  %v786_v63 = vsel %vm692_vm1, %v770_v36, -inf }
 0x262   : > { %v814_v40 = vmul.f32 1.442695, %v786_v63  ;;  %v751_v41 = vpop.xlane.xlu1 %750  ;;  %v846_v42 = vsel %vm709_vm2, %v1706_v38, 0.0 }
 0x263   : > { %v771_v45 = vsub.f32 %v1617_v59, %v751_v41  ;;  %847 = vadd.xlane.f32.xlu0 %v846_v42 }
 0x264   : > { %1211 = vpow2.f32 %v814_v40 }
 0x265   : > { %v1713_v46 = vpop.eup %1205  ;;  %v787_v47 = vsel %vm692_vm1, %v771_v45, -inf }
 0x266   : > { %v816_v48 = vmul.f32 1.442695, %v787_v47  ;;  %v754_v52 = vpop.xlane.xlu0 %753  ;;  %v849_v53 = vsel %vm709_vm2, %v1713_v46, 0.0 }
 0x267   : > { %v772_v54 = vsub.f32 %v1624_v4, %v754_v52  ;;  %850 = vadd.xlane.f32.xlu1 %v849_v53 }
 0x268   : > { %1213 = vpow2.f32 %v816_v48 }
 0x269   : > { %v1720_v55 = vpop.eup %1207  ;;  %v788_v58 = vsel %vm692_vm1, %v772_v54, -inf }
 0x26a   : > { %v818_v61 = vmul.f32 1.442695, %v788_v58  ;;  %v757_v0 = vpop.xlane.xlu1 %756  ;;  %v852_v2 = vsel %vm709_vm2, %v1720_v55, 0.0 }
 0x26b   : > { %v773_v3 = vsub.f32 %v1631_v10, %v757_v0  ;;  %853 = vadd.xlane.f32.xlu0 %v852_v2 }
 0x26c   : > { %1215 = vpow2.f32 %v818_v61 }
 0x26d   : > { %v1727_v5 = vpop.eup %1209  ;;  %v789_v8 = vsel %vm692_vm1, %v773_v3, -inf }
 0x26e   : > { %v820_v9 = vmul.f32 1.442695, %v789_v8  ;;  %v855_v11 = vsel %vm709_vm2, %v1727_v5, 0.0 }
 0x26f   : > { %856 = vadd.xlane.f32.xlu1 %v855_v11 }
 0x270   : > { %1217 = vpow2.f32 %v820_v9 }
 0x271   : > { %v1733_v12 = vpop.eup %1211 }
 0x272   : > { %v858_v14 = vsel %vm709_vm2, %v1733_v12, 0.0 }
 0x273   : > { %859 = vadd.xlane.f32.xlu0 %v858_v14 }
 0x275   : > { %v1737_v16 = vpop.eup %1213 }
 0x276   : > { %v861_v17 = vsel %vm709_vm2, %v1737_v16, 0.0 }
 0x277   : > { %862 = vadd.xlane.f32.xlu1 %v861_v17 }
 0x279   : > { %v1741_v18 = vpop.eup %1215 }
 0x27a   : > { %v864_v20 = vsel %vm709_vm2, %v1741_v18, 0.0 }
 0x27b   : > { %865 = vadd.xlane.f32.xlu0 %v864_v20 }
 0x27d   : > { %v1745_v37 = vpop.eup %1217 }
 0x27e   : > { %v867_v22 = vsel %vm709_vm2, %v1745_v37, 0.0 }
 0x27f   : > { %868 = vadd.xlane.f32.xlu1 %v867_v22 }
 0x2cc   : > { %v824_v23 = vpop.xlane.xlu0 %823 }
 0x2cd   : > { %1219 = vrcp.f32 %v824_v23 }
 0x2d0   : > { %v827_v24 = vpop.xlane.xlu1 %826 }
 0x2d1   : > { %1221 = vrcp.f32 %v827_v24 }
 0x2d4   : > { %v830_v26 = vpop.xlane.xlu0 %829 }
 0x2d5   : > { %1223 = vrcp.f32 %v830_v26 }
 0x2d8   : > { %v833_v27 = vpop.xlane.xlu1 %832 }
 0x2d9   : > { %1225 = vrcp.f32 %v833_v27 }
 0x2da   : > { %v1220_v29 = vpop.eup %1219 }
 0x2db   : > { %v886_v30 = vmul.f32 %v1220_v29, %v824_v23 }
 0x2dc   : > { %v836_v32 = vpop.xlane.xlu0 %835 }
 0x2dd   : > { %v902_v33 = vsub.f32 2.0, %v886_v30  ;;  %1227 = vrcp.f32 %v836_v32 }
 0x2de   : > { %v1222_v36 = vpop.eup %1221 }
 0x2df   : > { %v918_v63 = vmul.f32 %v1220_v29, %v902_v33  ;;  %v887_v40 = vmul.f32 %v1222_v36, %v827_v24 }
 0x2e0   : > { %v839_v41 = vpop.xlane.xlu1 %838 }
 0x2e1   : > { %v934_v42 = vmul.f32 %v1650_v34, %v918_v63  ;;  %v903_v45 = vsub.f32 2.0, %v887_v40  ;;  %1229 = vrcp.f32 %v839_v41 }
 0x2e2   : > { %v1224_v47 = vpop.eup %1223 }
 0x2e3   : > { %v950_v48 = vsel %vm692_vm1, %v934_v42, %v1526_v39  ;;  %v919_v52 = vmul.f32 %v1222_v36, %v903_v45  ;;  %v888_v53 = vmul.f32 %v1224_v47, %v830_v26 }
 0x2e4   : > { %966 = vst.msk [vmem:[%s1754_s22] sm:$0xff] %vm709_vm2, %v950_v48  ;;  %v842_v54 = vpop.xlane.xlu0 %841 }
 0x2e5   : > { %v935_v58 = vmul.f32 %v1657_v57, %v919_v52  ;;  %v904_v61 = vsub.f32 2.0, %v888_v53  ;;  %1231 = vrcp.f32 %v842_v54 }
 0x2e6   : > { %v1226_v0 = vpop.eup %1225 }
 0x2e7   : > { %v951_v34 = vsel %vm692_vm1, %v935_v58, %v1533_v44  ;;  %v920_v2 = vmul.f32 %v1224_v47, %v904_v61  ;;  %v889_v3 = vmul.f32 %v1226_v0, %v833_v27 }
 0x2e8   : > { %967 = vst.msk [vmem:[%s1754_s22 + $0x8] sm:$0xff] %vm709_vm2, %v951_v34  ;;  %v845_v39 = vpop.xlane.xlu1 %844 }
 0x2e9   : > { %v936_v8 = vmul.f32 %v1664_v49, %v920_v2  ;;  %v905_v9 = vsub.f32 2.0, %v889_v3  ;;  %1233 = vrcp.f32 %v845_v39 }
 0x2ea   : > { %v1228_v11 = vpop.eup %1227 }
 0x2eb   : > { %v952_v57 = vsel %vm692_vm1, %v936_v8, %v1540_v50  ;;  %v921_v14 = vmul.f32 %v1226_v0, %v905_v9  ;;  %v890_v17 = vmul.f32 %v1228_v11, %v836_v32 }
 0x2ec   : > { %968 = vst.msk [vmem:[%s1754_s22 + $0x10] sm:$0xff] %vm709_vm2, %v952_v57  ;;  %v848_v44 = vpop.xlane.xlu0 %847 }
 0x2ed   : > { %v937_v20 = vmul.f32 %v1671_v60, %v921_v14  ;;  %v906_v22 = vsub.f32 2.0, %v890_v17  ;;  %1235 = vrcp.f32 %v848_v44 }
 0x2ee   : > { %v1230_v23 = vpop.eup %1229 }
 0x2ef   : > { %v953_v49 = vsel %vm692_vm1, %v937_v20, %v1547_v56  ;;  %v922_v24 = vmul.f32 %v1228_v11, %v906_v22  ;;  %v891_v26 = vmul.f32 %v1230_v23, %v839_v41 }
 0x2f0   : > { %969 = vst.msk [vmem:[%s1754_s22 + $0x18] sm:$0xff] %vm709_vm2, %v953_v49  ;;  %v851_v50 = vpop.xlane.xlu1 %850 }
 0x2f1   : > { %v938_v27 = vmul.f32 %v1678_v6, %v922_v24  ;;  %v907_v29 = vsub.f32 2.0, %v891_v26  ;;  %1237 = vrcp.f32 %v851_v50 }
 0x2f2   : > { %v1232_v30 = vpop.eup %1231 }
 0x2f3   : > { %v954_v60 = vsel %vm692_vm1, %v938_v27, %v1554_v1  ;;  %v923_v32 = vmul.f32 %v1230_v23, %v907_v29  ;;  %v892_v33 = vmul.f32 %v1232_v30, %v842_v54 }
 0x2f4   : > { %970 = vst.msk [vmem:[%s1754_s22 + $0x20] sm:$0xff] %vm709_vm2, %v954_v60  ;;  %v854_v56 = vpop.xlane.xlu0 %853 }
 0x2f5   : > { %v939_v36 = vmul.f32 %v1685_v15, %v923_v32  ;;  %v908_v63 = vsub.f32 2.0, %v892_v33  ;;  %1239 = vrcp.f32 %v854_v56 }
 0x2f6   : > { %v1234_v40 = vpop.eup %1233 }
 0x2f7   : > { %v955_v6 = vsel %vm692_vm1, %v939_v36, %v1561_v7  ;;  %v924_v41 = vmul.f32 %v1232_v30, %v908_v63  ;;  %v893_v42 = vmul.f32 %v1234_v40, %v845_v39 }
 0x2f8   : > { %971 = vst.msk [vmem:[%s1754_s22 + $0x28] sm:$0xff] %vm709_vm2, %v955_v6  ;;  %v857_v1 = vpop.xlane.xlu1 %856 }
 0x2f9   : > { %v940_v45 = vmul.f32 %v1692_v21, %v924_v41  ;;  %v909_v47 = vsub.f32 2.0, %v893_v42  ;;  %1241 = vrcp.f32 %v857_v1 }
 0x2fa   : > { %v1236_v48 = vpop.eup %1235 }
 0x2fb   : > { %v956_v15 = vsel %vm692_vm1, %v940_v45, %v1568_v13  ;;  %v925_v52 = vmul.f32 %v1234_v40, %v909_v47  ;;  %v894_v53 = vmul.f32 %v1236_v48, %v848_v44 }
 0x2fc   : > { %972 = vst.msk [vmem:[%s1754_s22 + $0x30] sm:$0xff] %vm709_vm2, %v956_v15  ;;  %v860_v7 = vpop.xlane.xlu0 %859 }
 0x2fd   : > { %v941_v54 = vmul.f32 %v1699_v28, %v925_v52  ;;  %v910_v58 = vsub.f32 2.0, %v894_v53  ;;  %1243 = vrcp.f32 %v860_v7 }
 0x2fe   : > { %v1238_v61 = vpop.eup %1237 }
 0x2ff   : > { %v957_v21 = vsel %vm692_vm1, %v941_v54, %v1575_v19  ;;  %v926_v0 = vmul.f32 %v1236_v48, %v910_v58  ;;  %v895_v34 = vmul.f32 %v1238_v61, %v851_v50 }
 0x300   : > { %973 = vst.msk [vmem:[%s1754_s22 + $0x38] sm:$0xff] %vm709_vm2, %v957_v21  ;;  %v863_v13 = vpop.xlane.xlu1 %862 }
 0x301   : > { %v942_v2 = vmul.f32 %v1706_v38, %v926_v0  ;;  %v911_v3 = vsub.f32 2.0, %v895_v34  ;;  %1245 = vrcp.f32 %v863_v13 }
 0x302   : > { %v1240_v39 = vpop.eup %1239 }
 0x303   : > { %v958_v28 = vsel %vm692_vm1, %v942_v2, %v1582_v25  ;;  %v927_v8 = vmul.f32 %v1238_v61, %v911_v3  ;;  %v896_v9 = vmul.f32 %v1240_v39, %v854_v56 }
 0x304   : > { %974 = vst.msk [vmem:[%s1754_s22 + $0x40] sm:$0xff] %vm709_vm2, %v958_v28  ;;  %v866_v19 = vpop.xlane.xlu0 %865 }
 0x305   : > { %v943_v11 = vmul.f32 %v1713_v46, %v927_v8  ;;  %v912_v57 = vsub.f32 2.0, %v896_v9  ;;  %1247 = vrcp.f32 %v866_v19 }
 0x306   : > { %v1242_v14 = vpop.eup %1241 }
 0x307   : > { %v959_v38 = vsel %vm692_vm1, %v943_v11, %v1589_v31  ;;  %v928_v17 = vmul.f32 %v1240_v39, %v912_v57  ;;  %v897_v44 = vmul.f32 %v1242_v14, %v857_v1 }
 0x308   : > { %975 = vst.msk [vmem:[%s1754_s22 + $0x48] sm:$0xff] %vm709_vm2, %v959_v38  ;;  %v869_v25 = vpop.xlane.xlu1 %868 }
 0x309   : > { %v944_v20 = vmul.f32 %v1720_v55, %v928_v17  ;;  %v913_v22 = vsub.f32 2.0, %v897_v44  ;;  %1249 = vrcp.f32 %v869_v25 }
 0x30a   : > { %v1244_v23 = vpop.eup %1243 }
 0x30b   : > { %v960_v46 = vsel %vm692_vm1, %v944_v20, %v1596_v62  ;;  %v929_v49 = vmul.f32 %v1242_v14, %v913_v22  ;;  %v898_v24 = vmul.f32 %v1244_v23, %v860_v7 }
 0x30c   : > { %976 = vst.msk [vmem:[%s1754_s22 + $0x50] sm:$0xff] %vm709_vm2, %v960_v46 }
 0x30d   : > { %v945_v31 = vmul.f32 %v1727_v5, %v929_v49  ;;  %v914_v26 = vsub.f32 2.0, %v898_v24 }
 0x30e   : > { %v1246_v50 = vpop.eup %1245 }
 0x30f   : > { %v961_v55 = vsel %vm692_vm1, %v945_v31, %v1603_v43  ;;  %v930_v27 = vmul.f32 %v1244_v23, %v914_v26  ;;  %v899_v29 = vmul.f32 %v1246_v50, %v863_v13 }
 0x310   : > { %977 = vst.msk [vmem:[%s1754_s22 + $0x58] sm:$0xff] %vm709_vm2, %v961_v55 }
 0x311   : > { %v946_v62 = vmul.f32 %v1733_v12, %v930_v27  ;;  %v915_v30 = vsub.f32 2.0, %v899_v29 }
 0x312   : > { %v1248_v60 = vpop.eup %1247 }
 0x313   : > { %v962_v5 = vsel %vm692_vm1, %v946_v62, %v1610_v51  ;;  %v931_v32 = vmul.f32 %v1246_v50, %v915_v30  ;;  %v900_v33 = vmul.f32 %v1248_v60, %v866_v19 }
 0x314   : > { %978 = vst.msk [vmem:[%s1754_s22 + $0x60] sm:$0xff] %vm709_vm2, %v962_v5 }
 0x315   : > { %v947_v43 = vmul.f32 %v1737_v16, %v931_v32  ;;  %v916_v56 = vsub.f32 2.0, %v900_v33 }
 0x316   : > { %v1250_v36 = vpop.eup %1249 }
 0x317   : > { %v963_v12 = vsel %vm692_vm1, %v947_v43, %v1617_v59  ;;  %v932_v63 = vmul.f32 %v1248_v60, %v916_v56  ;;  %v901_v40 = vmul.f32 %v1250_v36, %v869_v25 }
 0x318   : > { %979 = vst.msk [vmem:[%s1754_s22 + $0x68] sm:$0xff] %vm709_vm2, %v963_v12 }
 0x319   : > { %v948_v6 = vmul.f32 %v1741_v18, %v932_v63  ;;  %v917_v51 = vsub.f32 2.0, %v901_v40 }
 0x31b   : > { %v964_v41 = vsel %vm692_vm1, %v948_v6, %v1624_v4  ;;  %v933_v42 = vmul.f32 %v1250_v36, %v917_v51 }
 0x31c   : > { %980 = vst.msk [vmem:[%s1754_s22 + $0x70] sm:$0xff] %vm709_vm2, %v964_v41 }
 0x31d   : > { %v949_v16 = vmul.f32 %v1745_v37, %v933_v42 }
 0x31f   : > { %v965_v59 = vsel %vm692_vm1, %v949_v16, %v1631_v10 }
 0x320   : > { %981 = vst.msk [vmem:[%s1754_s22 + $0x78] sm:$0xff] %vm709_vm2, %v965_v59 }
 0x321 PF: > { %s15_s18 = sadd.s32 1, %s1257_s18  }
 0x322   : > { %p12_p4 = scmp.ge.s32.totalorder %s15_s18, 4  }
 0x324   :  { %14 = sbr.rel (!%p12_p4) target bundleno = 1 (0x1), region = 70 }

</bundles_post_ra>
